<compile_context>
chip_gen: v5e
topology: v5e:2x2
jax: 0.10.0
libtpu: 0.0.40
codegen_flags: <defaults>
</compile_context>

<pallas_src>
import functools

import jax
import jax.numpy as jnp
from jax.experimental import pallas as pl
from jax.experimental.pallas import tpu as pltpu


def _round_up(a, b):
    return ((a + b - 1) // b) * b


def _net_act_kernel(x_ref, w1_ref, b1_ref, w2_ref, b2_ref, o_ref, *, inv_temp):
    # x_ref:  (TM, D_in)   f32  (cast to bf16 here; VPU cast hides under DMA)
    # w1_ref: (D_in, H)    bf16 (grid-resident)
    # b1_ref: (1, H)       f32  (grid-resident)
    # w2_ref: (H, O_PAD)   bf16 (pad columns = 0, grid-resident)
    # b2_ref: (1, O_PAD)   f32  (= b2/temp on real lanes, -1e30 on pad lanes)
    # o_ref:  (TM, O)      f32  (narrow HBM output; only real columns stored)
    x = x_ref[...].astype(jnp.bfloat16)

    # fc1 + ReLU : bf16 MXU matmul, f32 accumulate / elementwise.
    h = jnp.dot(x, w1_ref[...], preferred_element_type=jnp.float32)
    h = jnp.maximum(h + b1_ref[...], 0.0)

    # fc2; temperature applied here in f32 (exact), bias pre-scaled in f32.
    logits = jnp.dot(h.astype(jnp.bfloat16), w2_ref[...],
                     preferred_element_type=jnp.float32)
    logits = logits * inv_temp + b2_ref[...]   # pad lanes pick up -1e30

    # Softmax over the lane-dense (128-wide) padded axis, all f32.
    m = jnp.max(logits, axis=-1, keepdims=True)
    e = jnp.exp(logits - m)                    # exp(-1e30 - m) == 0 exactly
    denom = jnp.sum(e, axis=-1, keepdims=True)
    probs = e / denom                          # exact: rows sum to 1 (f32)

    # Store only the real output columns -> narrow HBM writeback.
    o_ref[...] = probs[:, : o_ref.shape[-1]].astype(o_ref.dtype)


def net_act_forward(x, w1, b1, w2, b2, softmax_temp=1.0, tile_m=2048):
    """x: (B, S, D_in) float32.  w1: (D_in, H), b1: (H,), w2: (H, O), b2: (O,).
    Returns softmax probabilities of shape (B, S, O), float32."""
    B, S, D_in = x.shape
    H = w1.shape[1]
    O = w2.shape[1]
    M = B * S

    inv_temp = 1.0 / float(softmax_temp)

    # Internal lane-dense logits: pad fc2's output dim to 128 lanes.  Padded
    # weight columns are zero and padded bias lanes are -1e30, so softmax
    # assigns them zero probability; only the real O columns reach HBM.
    O_PAD = _round_up(max(O, 128), 128)
    w2p = jnp.zeros((H, O_PAD), jnp.float32).at[:, :O].set(w2.astype(jnp.float32))
    b2p = jnp.full((1, O_PAD), -1e30, jnp.float32).at[0, :O].set(
        b2.astype(jnp.float32) * inv_temp)

    # bf16 matmul operands (native MXU dtype); biases stay f32.
    w1_bf = w1.astype(jnp.bfloat16)
    w2_bf = w2p.astype(jnp.bfloat16)
    b1_2d = b1.reshape(1, H).astype(jnp.float32)

    # Row tiling: multiple of 8 sublanes, >=2 grid steps when M allows (so the
    # "parallel" axis shards across v7x's two TensorCores).  No jnp.pad of x:
    # the final partial block's out-of-range output rows are discarded.
    TM = max(8, min(int(tile_m), _round_up(pl.cdiv(M, 2), 8)))
    grid = (pl.cdiv(M, TM),)

    x2d = x.reshape(M, D_in)   # f32 in HBM; bf16 cast happens in-kernel

    cost = pl.CostEstimate(
        flops=2 * M * (D_in * H + H * O_PAD) + 6 * M * O_PAD,
        transcendentals=M * O_PAD,
        bytes_accessed=(M * D_in * 4 + M * O * 4
                        + D_in * H * 2 + H * O_PAD * 2 + (H + O_PAD) * 4),
    )

    kernel = functools.partial(_net_act_kernel, inv_temp=inv_temp)

    out = pl.pallas_call(
        kernel,
        out_shape=jax.ShapeDtypeStruct((M, O), jnp.float32),
        grid_spec=pltpu.PrefetchScalarGridSpec(
            num_scalar_prefetch=0,
            grid=grid,
            in_specs=[
                pl.BlockSpec((TM, D_in), lambda i: (i, 0)),   # x: tiled rows
                pl.BlockSpec((D_in, H), lambda i: (0, 0)),    # w1: resident
                pl.BlockSpec((1, H), lambda i: (0, 0)),       # b1: resident
                pl.BlockSpec((H, O_PAD), lambda i: (0, 0)),   # w2: resident
                pl.BlockSpec((1, O_PAD), lambda i: (0, 0)),   # b2: resident
            ],
            out_specs=pl.BlockSpec((TM, O), lambda i: (i, 0)),  # narrow output
        ),
        compiler_params=pltpu.CompilerParams(
            # Independent row tiles -> megacore sharding on v7x (no-op on
            # v5e/v6e).  VMEM footprint is tiny on every generation.
            dimension_semantics=("parallel",),
            vmem_limit_bytes=32 * 1024 * 1024,
        ),
        cost_estimate=cost,
    )(x2d, w1_bf, b1_2d, w2_bf, b2p)

    return out.reshape(B, S, O)


def init_params(key, input_size, hidden_size, output_size_act):
    """Deterministic synthetic init mimicking nn.Linear (uniform +/- 1/sqrt(fan_in)).
    Weights are stored transposed: (in_features, out_features)."""
    k1, k2, k3, k4 = jax.random.split(key, 4)
    bound1 = 1.0 / jnp.sqrt(input_size)
    bound2 = 1.0 / jnp.sqrt(hidden_size)
    w1 = jax.random.uniform(k1, (input_size, hidden_size), jnp.float32,
                            -bound1, bound1)
    b1 = jax.random.uniform(k2, (hidden_size,), jnp.float32, -bound1, bound1)
    w2 = jax.random.uniform(k3, (hidden_size, output_size_act), jnp.float32,
                            -bound2, bound2)
    b2 = jax.random.uniform(k4, (output_size_act,), jnp.float32,
                            -bound2, bound2)
    return w1, b1, w2, b2


def _reference(x, w1, b1, w2, b2, softmax_temp=1.0):
    h = jnp.maximum(x @ w1 + b1, 0.0)
    logits = (h @ w2 + b2) / softmax_temp
    return jax.nn.softmax(logits, axis=2)


if __name__ == "__main__":
    # Small shapes consistent with the module's forward (3-D input, softmax dim=2).
    batch, seq = 2, 8
    input_size, hidden_size, output_size_act = 16, 32, 4
    softmax_temp = 1.0

    key = jax.random.PRNGKey(0)
    kx, kp = jax.random.split(key)
    x = jax.random.normal(kx, (batch, seq, input_size), jnp.float32)
    w1, b1, w2, b2 = init_params(kp, input_size, hidden_size, output_size_act)

    out = net_act_forward(x, w1, b1, w2, b2, softmax_temp)
    out = jax.block_until_ready(out)

    ref = _reference(x, w1, b1, w2, b2, softmax_temp)
    assert out.shape == (batch, seq, output_size_act)
    # bf16 MXU operands -> relaxed tolerance vs the f32 reference.
    assert jnp.allclose(out, ref, atol=2e-2, rtol=2e-2)
    # Exact division in the softmax -> rows sum to 1 up to f32 rounding.
    assert jnp.allclose(jnp.sum(out, axis=-1), 1.0, atol=1e-3)

    print("KERNEL_OK")
</pallas_src>

<mosaic_0001>
module attributes {stable_mosaic.version = 11 : i64} {
  func.func @_net_act_kernel(%arg0: i32, %arg1: memref<8x16xf32, #tpu.memory_space<vmem>>, %arg2: memref<16x32xbf16, #tpu.memory_space<vmem>>, %arg3: memref<1x32xf32, #tpu.memory_space<vmem>>, %arg4: memref<32x128xbf16, #tpu.memory_space<vmem>>, %arg5: memref<1x128xf32, #tpu.memory_space<vmem>>, %arg6: memref<8x4xf32, #tpu.memory_space<vmem>>) attributes {dimension_semantics = [#tpu.dimension_semantics<parallel>], iteration_bounds = array<i64: 2>, scalar_prefetch = 0 : i64, scratch_operands = 0 : i64, tpu.core_type = #tpu.core_type<tc>, window_params = [{transform_indices = @transform_0, window_bounds = array<i64: 8, 16>}, {pipeline_mode = #tpu.pipeline_mode<synchronous>, transform_indices = @transform_1, window_bounds = array<i64: 16, 32>}, {pipeline_mode = #tpu.pipeline_mode<synchronous>, transform_indices = @transform_2, window_bounds = array<i64: 1, 32>}, {pipeline_mode = #tpu.pipeline_mode<synchronous>, transform_indices = @transform_3, window_bounds = array<i64: 32, 128>}, {pipeline_mode = #tpu.pipeline_mode<synchronous>, transform_indices = @transform_4, window_bounds = array<i64: 1, 128>}, {transform_indices = @transform_5, window_bounds = array<i64: 8, 4>}]} {
    %c0 = arith.constant 0 : index
    %c0_0 = arith.constant 0 : index
    %0 = vector.load %arg1[%c0, %c0_0] : memref<8x16xf32, #tpu.memory_space<vmem>>, vector<8x16xf32>
    %1 = arith.truncf %0 : vector<8x16xf32> to vector<8x16xbf16>
    %c0_1 = arith.constant 0 : index
    %c0_2 = arith.constant 0 : index
    %2 = vector.load %arg2[%c0_1, %c0_2] : memref<16x32xbf16, #tpu.memory_space<vmem>>, vector<16x32xbf16>
    %cst = arith.constant dense<0.000000e+00> : vector<8x32xf32>
    %3 = tpu.matmul %1, %2, %cst {dimension_numbers = #tpu.dot_dimension_numbers<[1], [0], [0], [1], [0, 0, 1, 1], [], []>} : vector<8x16xbf16>, vector<16x32xbf16>, vector<8x32xf32> -> vector<8x32xf32>
    %c0_3 = arith.constant 0 : index
    %c0_4 = arith.constant 0 : index
    %4 = vector.load %arg3[%c0_3, %c0_4] : memref<1x32xf32, #tpu.memory_space<vmem>>, vector<1x32xf32>
    %5 = vector.broadcast %4 : vector<1x32xf32> to vector<8x32xf32>
    %6 = arith.addf %3, %5 : vector<8x32xf32>
    %cst_5 = arith.constant 0.000000e+00 : f32
    %7 = vector.broadcast %cst_5 : f32 to vector<8x32xf32>
    %8 = arith.maximumf %6, %7 : vector<8x32xf32>
    %9 = arith.truncf %8 : vector<8x32xf32> to vector<8x32xbf16>
    %c0_6 = arith.constant 0 : index
    %c0_7 = arith.constant 0 : index
    %10 = vector.load %arg4[%c0_6, %c0_7] : memref<32x128xbf16, #tpu.memory_space<vmem>>, vector<32x128xbf16>
    %cst_8 = arith.constant dense<0.000000e+00> : vector<8x128xf32>
    %11 = tpu.matmul %9, %10, %cst_8 {dimension_numbers = #tpu.dot_dimension_numbers<[1], [0], [0], [1], [0, 0, 1, 1], [], []>} : vector<8x32xbf16>, vector<32x128xbf16>, vector<8x128xf32> -> vector<8x128xf32>
    %cst_9 = arith.constant 1.000000e+00 : f32
    %12 = vector.broadcast %cst_9 : f32 to vector<8x128xf32>
    %13 = arith.mulf %11, %12 : vector<8x128xf32>
    %c0_10 = arith.constant 0 : index
    %c0_11 = arith.constant 0 : index
    %14 = vector.load %arg5[%c0_10, %c0_11] : memref<1x128xf32, #tpu.memory_space<vmem>>, vector<1x128xf32>
    %15 = vector.broadcast %14 : vector<1x128xf32> to vector<8x128xf32>
    %16 = arith.addf %13, %15 : vector<8x128xf32>
    %cst_12 = arith.constant dense<0xFF800000> : vector<8xf32>
    %17 = vector.multi_reduction <maximumf>, %16, %cst_12 [1] : vector<8x128xf32> to vector<8xf32>
    %18 = vector.shape_cast %17 : vector<8xf32> to vector<8x1xf32>
    %19 = vector.broadcast %18 : vector<8x1xf32> to vector<8x128xf32>
    %20 = arith.subf %16, %19 : vector<8x128xf32>
    %21 = math.exp %20 : vector<8x128xf32>
    %cst_13 = arith.constant dense<0.000000e+00> : vector<8xf32>
    %22 = vector.multi_reduction <add>, %21, %cst_13 [1] : vector<8x128xf32> to vector<8xf32>
    %23 = vector.shape_cast %22 : vector<8xf32> to vector<8x1xf32>
    %24 = vector.broadcast %23 : vector<8x1xf32> to vector<8x128xf32>
    %25 = arith.divf %21, %24 : vector<8x128xf32>
    %26 = vector.extract_strided_slice %25 {offsets = [0, 0], sizes = [8, 4], strides = [1, 1]} : vector<8x128xf32> to vector<8x4xf32>
    %c0_14 = arith.constant 0 : index
    %c0_15 = arith.constant 0 : index
    %27 = vector.load %arg6[%c0_14, %c0_15] : memref<8x4xf32, #tpu.memory_space<vmem>>, vector<8x4xf32>
    tpu.vector_store %arg6[%c0_14, %c0_15], %26 {strides = array<i32>} : memref<8x4xf32, #tpu.memory_space<vmem>>, vector<8x4xf32>,
    return
  }
  func.func @transform_0(%arg0: i32) -> (i32, i32) {
    %c0_i32 = arith.constant 0 : i32
    %c0_i32_0 = arith.constant 0 : i32
    return %arg0, %c0_i32 : i32, i32
  }
  func.func @transform_1(%arg0: i32) -> (i32, i32) {
    %c0_i32 = arith.constant 0 : i32
    %c0_i32_0 = arith.constant 0 : i32
    %c0_i32_1 = arith.constant 0 : i32
    return %c0_i32, %c0_i32_0 : i32, i32
  }
  func.func @transform_2(%arg0: i32) -> (i32, i32) {
    %c0_i32 = arith.constant 0 : i32
    %c0_i32_0 = arith.constant 0 : i32
    %c0_i32_1 = arith.constant 0 : i32
    return %c0_i32, %c0_i32_0 : i32, i32
  }
  func.func @transform_3(%arg0: i32) -> (i32, i32) {
    %c0_i32 = arith.constant 0 : i32
    %c0_i32_0 = arith.constant 0 : i32
    %c0_i32_1 = arith.constant 0 : i32
    return %c0_i32, %c0_i32_0 : i32, i32
  }
  func.func @transform_4(%arg0: i32) -> (i32, i32) {
    %c0_i32 = arith.constant 0 : i32
    %c0_i32_0 = arith.constant 0 : i32
    %c0_i32_1 = arith.constant 0 : i32
    return %c0_i32, %c0_i32_0 : i32, i32
  }
  func.func @transform_5(%arg0: i32) -> (i32, i32) {
    %c0_i32 = arith.constant 0 : i32
    %c0_i32_0 = arith.constant 0 : i32
    return %arg0, %c0_i32 : i32, i32
  }
}

</mosaic_0001>

<bundles_post_ra>
// kernel: tpu_custom_call.1
= control target key start
LH: loop header
LB: loop body
LE: loop exit
PB: predicated region body
PF: predicated region fallthrough
CT: control target
= control target key end

     0   :  { %10 = vsyncpa [#allocation3], 0  ;;  %s832_s0 = inlined_call_operand.hbm [shape: f32[16,16], index: 0, kind: input, shape index: {}]   ;;  %s833_s1 = inlined_call_operand.hbm [shape: bf16[16,32], index: 1, kind: input, shape index: {}]   ;;  %s834_s2 = inlined_call_operand.vmem [shape: f32[1,32], index: 2, kind: input, shape index: {}]   ;;  %s835_s3 = inlined_call_operand.hbm [shape: bf16[32,128], index: 3, kind: input, shape index: {}]   ;;  %s836_s4 = inlined_call_operand.vmem [shape: f32[1,128], index: 4, kind: input, shape index: {}]   ;;  %s837_s5 = inlined_call_operand.vmem [shape: f32[16,4], index: 5, kind: output, shape index: {}]  }
   0x1   :  { %12 = vsyncpa [#allocation3 + $0x1], 0 }
   0x2   :  { %13 = vsyncpa [#allocation5], 0  ;;  %s717_s18 = smov 0   ;;  %s719_s19 = smov 0  }
   0x3   :  { %s721_s20 = smov 0   ;;  %s723_s21 = smov 0  }
   0x4 LB: > { %s171_s24 = sshll.u32 %s833_s1, 4  ;;  %s741_s25 = sadd.s32 4294967295, %s681_s21   ;;  %s681_s21 = sphi %s723_s21, %s844_s21   ;;  %s677_s20 = sphi %s721_s20, %s843_s20   ;;  %s673_s19 = sphi %s719_s19, %s842_s19   ;;  %s669_s18 = sphi %s717_s18, %s841_s18   ;;  %s172_s24 = int_to_ptr.hbm [resolvable:$true] %s171_s24 }
   0x5   : > { %p455_p0 = scmp.ge.s32.totalorder %s681_s21, 1  ;;  %p40_p1 = scmp.eq.s32.totalorder %s741_s25, 0 }
   0x6   : > { %p160_p2 = scmp.lt.s32.totalorder %s681_s21, 3  ;;  %s683_s27 = smov [#allocation4]  }
   0x7   : > { %s173_s28 = sshll.u32 %s683_s27, 4  ;;  %s188_s6 = sshll.u32 %s835_s3, 4  ;;  %s174_s28 = int_to_ptr.vmem [resolvable:$true] %s173_s28  ;;  %s189_s6 = int_to_ptr.hbm [resolvable:$true] %s188_s6 }
   0x8   : > { %p746_p3 = pnand %p455_p0, %p160_p2  ;;  %s684_s7 = smov [#allocation6]  }
   0x9   : > { %s190_s8 = sshll.u32 %s684_s7, 4  ;;  %s685_s9 = smov 64   ;;  %s191_s8 = int_to_ptr.vmem [resolvable:$true] %s190_s8 }
   0xa   : > { %p495_p4 = pneg %p746_p3  ;;  %s686_s10 = smov 4  }
   0xb   : > { %s758_s11 = sadd.s32 1, %s681_s21   ;;  %s26_s13 = sadd.s32 1, %s677_s20 }
   0xc   : > { %p496_p5 = pnand %p495_p4, %p40_p1  ;;  %s23_s12 = ssub.s32 %s681_s21, %s758_s11 }
   0xd   : > { %p24_p6 = scmp.eq.s32.totalorder %s23_s12, 0  ;;  %p33_p7 = scmp.ne.s32.totalorder %s677_s20, %s673_s19 }
   0xe   : > { %498 = dma.hbm_to_vmem [thread:$0]  (!%p496_p5), %s172_s24, 128, %s174_s28, [#allocation5], %s685_s9, %s685_s9, %s686_s10  }
   0xf   : > { %501 = dma.hbm_to_vmem [thread:$0]  (!%p496_p5), %s189_s6, 256, %s191_s8, [#allocation5], %s685_s9, %s685_s9, %s686_s10  }
  0x10   : > { %p34_p8 = scmp.eq.s32.totalorder %s681_s21, 0  ;;  %p39_p9 = scmp.ne.s32.totalorder %s673_s19, %s669_s18 }
  0x11   : > { %s769_s14 = scalar_select %p24_p6, %s677_s20, %s26_s13  }
  0x12   : > { %p773_p10 = por %p40_p1, %p39_p9  ;;  %p508_p11 = scmp.lt.s32.totalorder %s681_s21, 2 }
  0x13   : > { %s207_s16 = sand.u32 1, %s677_s20   ;;  %s460_s17 = sshll.u32 %s681_s21, 3 }
  0x14   : > { %p35_p12 = por %p34_p8, %p33_p7  ;;  %s459_s22 = sshll.u32 %s207_s16, 3 }
  0x15   : > { %s215_s27 = scalar_lea.hbm %s832_s0, %s460_s17  ;;  %s211_s29 = scalar_lea.vmem [#allocation2], %s459_s22 }
  0x16   : > { %s217_s28 = sshll.u32 %s215_s27, 4  ;;  %s219_s30 = sshll.u32 %s211_s29, 4  ;;  %s218_s28 = int_to_ptr.hbm [resolvable:$true] %s217_s28  ;;  %s220_s30 = int_to_ptr.vmem [resolvable:$true] %s219_s30 }
  0x17   : > { %p783_p13 = pnand %p508_p11, %p35_p12  ;;  %s208_s6 = scalar_lea.sflag [#allocation3], %s207_s16 }
  0x18   : > { %s613_s7 = sshra.s32 %s218_s28, 4  ;;  %s620_s10 = scalar_lea.hbm %s832_s0, 16  ;;  %s614_s7 = int_to_ptr.hbm [resolvable:$true] %s613_s7 }
  0x19   : > { %s615_s21 = scalar_lea.hbm %s614_s7, 8  ;;  %p617_p2 = pneg %p783_p13 }
  0x1a   : > { %p616_p0 = scmp.ne.s32.totalorder %s614_s7, %s615_s21  ;;  %p621_p6 = scmp.lt.s32.totalorder %s614_s7, %s832_s0 }
  0x1b   : > { %p622_p7 = scmp.lt.s32.totalorder %s620_s10, %s615_s21 }
  0x1c   : > { %p618_p4 = pnand %p617_p2, %p616_p0 }
  0x1d   : > { %p623_p8 = por %p622_p7, %p621_p6 }
  0x1e   : > { %p619_p5 = pneg %p618_p4 }
  0x20   : > { %p624_p9 = pnand %p623_p8, %p619_p5 }
  0x22   : > { %627 = shalt.err (!%p624_p9)
}
  0x23   : > { %505 = dma.hbm_to_vmem [thread:$0]  (!%p783_p13), %s218_s28, 128, %s220_s30, %s208_s6  }
  0x24   : > { %228 = sbr.rel (%p746_p3) target bundleno = 571 (0x23b), region = 40  ;;  %s230_s16 = sand.u32 (!%p746_p3), 1, %s673_s19  }
  0x25   : > { %s462_s17 = sshll.u32 (!%p746_p3), %s230_s16, 3  ;;  %s231_s22 = scalar_lea.sflag (!%p746_p3), [#allocation3], %s230_s16 }
  0x26   : > { %s234_s23 = scalar_lea.vmem (!%p746_p3), [#allocation2], %s462_s17 }
  0x29   : > { %660 = dma.done.wait (%p773_p10), %s231_s22, 128  }
  0x2a   : > { %662 = vsyncadd (%p773_p10), %s231_s22, 4294967168 }
  0x2b   : > { %664 = dma.done.wait (%p40_p1), [#allocation5], 384  }
  0x2c   : > { %666 = vsyncadd (%p40_p1), [#allocation5], 4294966912  ;;  %v482_v0 = vld [vmem:[#allocation4] sm:$0xff]  ;;  %v276_v1 = vld [vmem:[%s234_s23] sm:$0xff]  ;;  %vm290_vm0 = vcmask 130048   ;;  %vm329_vm1 = vcmask 261120  }
  0x2d   : > { %v277_v2 = vpack.c.bf16 %v276_v1, %v276_v1  ;;  %301 = vmatpush.bf16.msra.mxu0 %v482_v0  ;;  %v484_v3 = vld [vmem:[#allocation6 + $0x8] sm:$0xff]  ;;  %v483_v4 = vld [vmem:[#allocation6] sm:$0xff]  ;;  %p271_p1 = scmp.lt.s32.totalorder %s741_s25, 1  ;;  %vm368_vm6 = vcmask 31744  }
  0x2e   : > { %339 = vmatpush.bf16.msra.mxu1 %v484_v3  ;;  %v547_v5 = vld [vmem:[%s834_s2] ss:$0 sm:$0xff] }
  0x2f   : > { %v548_v11 = vld [vmem:[%s836_s4] ss:$0 sm:$0xff]  ;;  %s846_s25 = smov (!%p271_p1, %s741_s25), 1 }
  0x30   : > { %470 = vmatmul.msk.bf16.vlgmr.msra.gmra.mxu0 %vm290_vm0, %v277_v2  ;;  %s465_s28 = sshll.u32 %s846_s25, 3 }
  0x31   : > { %s274_s18 = scalar_lea.vmem %s837_s5, %s465_s28 }
  0x32   : > { %340 = vmatpush.bf16.msra.mxu1 %v483_v4 }
  0xad   : > { %v303_v6 = vpop.f32.mrf.mxu0 }
  0xae   : > { %v304_v7 = vadd.f32 %v547_v5, %v303_v6 }
  0xb0   : > { %v307_v8 = vmax.f32 %v304_v7, 0.0 }
  0xb2   : > { %v308_v9 = vpack.c.bf16 %v307_v8, %v307_v8 }
  0xb4   : > { %479 = vmatmul.msk.bf16.vlgmr.msra.gmra.mxu1 %vm329_vm1, %v308_v9 }
  0xb5   : > { %v305_v10 = vpop.f32.mrf.mxu0 }
 0x131   : > { %v342_v12 = vpop.f32.mrf.mxu1 }
 0x132   : > { %v343_v13 = vadd.f32 %v548_v11, %v342_v12 }
 0x134   : > { %346 = vmax.xlane.f32.xlu0 %v343_v13 }
 0x139   : > { %v344_v14 = vpop.f32.mrf.mxu1 }
 0x1a7   : > { %v347_v15 = vpop.xlane.xlu0 %346 }
 0x1a8   : > { %v348_v16 = vsub.f32 %v343_v13, %v347_v15 }
 0x1aa   : > { %v349_v17 = vmul.f32 1.442695, %v348_v16 }
 0x1ac   : > { %549 = vpow2.f32 %v349_v17 }
 0x1b2   : > { %v550_v18 = vpop.eup %549 }
 0x1b3   : > { %351 = vadd.xlane.f32.xlu0 %v550_v18 }
 0x226   : > { %v352_v19 = vpop.xlane.xlu0 %351 }
 0x227   : > { %551 = vrcp.f32 %v352_v19  ;;  %v364_v23 = vand.u32 2147483648, %v352_v19  ;;  %v362_v25 = vand.u32 2147483647, %v352_v19  ;;  %vm358_vm3 = vweird.f32 %v352_v19 }
 0x229   : > { %v365_v27 = vor.u32 1.1754944e-38, %v364_v23  ;;  %vm363_vm5 = vcmp.eq.f32.partialorder %v362_v25, 8.507059e+37 }
 0x22d   : > { %v552_v20 = vpop.eup %551 }
 0x22e   : > { %v354_v21 = vmul.f32 %v552_v20, %v352_v19  ;;  %vm359_vm2 = vweird.f32 %v552_v20 }
 0x22f   : > { %vm360_vm4 = vmor %vm358_vm3, %vm359_vm2 }
 0x230   : > { %v355_v22 = vsub.f32 1.0, %v354_v21 }
 0x232   : > { %v356_v24 = vmul.f32 %v552_v20, %v355_v22 }
 0x234   : > { %v357_v26 = vadd.f32 %v552_v20, %v356_v24 }
 0x236   : > { %v361_v28 = vsel %vm360_vm4, %v552_v20, %v357_v26 }
 0x237   : > { %v366_v29 = vsel %vm363_vm5, %v365_v27, %v361_v28 }
 0x238   : > { %v367_v30 = vmul.f32 %v550_v18, %v366_v29 }
 0x23a   : > { %369 = vst.msk [vmem:[%s274_s18] sm:$0xff] %vm368_vm6, %v367_v30 }
 0x23b PF: > { %p16_p3 = scmp.ge.s32.totalorder %s758_s11, 4   ;;  %s841_s18 = smov %s673_s19 }
 0x23c   : > { %s842_s19 = smov %s677_s20  ;;  %s843_s20 = smov %s769_s14 }
 0x23d   : > { %s844_s21 = smov %s758_s11  ;;  %18 = sbr.rel (!%p16_p3) target bundleno = 4 (0x4), region = 88 }
 0x242   :  { %389 = vsyncpa [#allocation3], 1 }
 0x243   :  { %391 = vsyncpa [#allocation3 + $0x1], 1 }
 0x244   :  { %392 = vsyncpa [#allocation5], 1 }

</bundles_post_ra>
